<compile_context>
chip_gen: v7x
topology: tpu7x:2x2x1
jax: 0.10.0
libtpu: 0.0.40
codegen_flags: <defaults>
</compile_context>

<pallas_src>
import jax
import jax.numpy as jnp
from jax.experimental import pallas as pl
from jax.experimental.pallas import tpu as pltpu


def _round_up(n, m):
    return (n + m - 1) // m * m


# ----------------------------------------------------------------------------
# Kernel
# ----------------------------------------------------------------------------
def _fused_heads_kernel(x_ref, w1_ref, b1_ref, w2_ref, b2_ref, sig_ref, o_ref):
    # First (fused) linear: (TM, Cin) @ (Cin, H*Cin); bf16 MXU, f32 accumulate.
    h = jnp.dot(x_ref[...], w1_ref[...], preferred_element_type=jnp.float32)
    h = h + b1_ref[...]                       # f32 bias add (broadcast over rows)
    h = jnp.maximum(h, 0.01 * h)              # LeakyReLU, torch default slope 0.01
    # Second (block-diagonal) linear: (TM, H*Cin) @ (H*Cin, total_out).
    y = jnp.dot(h.astype(w2_ref.dtype), w2_ref[...],
                preferred_element_type=jnp.float32)
    y = y + b2_ref[...]
    # Per-head post-activation: Sigmoid on gamma/brightness columns only.
    y = jnp.where(sig_ref[...] > 0.5, jax.nn.sigmoid(y), y)
    o_ref[...] = y.astype(o_ref.dtype)


# ----------------------------------------------------------------------------
# One-time parameter prep (hoisted out of the per-call wrapper)
# ----------------------------------------------------------------------------
def _block_diag(mats):
    rows = sum(m.shape[0] for m in mats)
    cols = sum(m.shape[1] for m in mats)
    out = jnp.zeros((rows, cols), mats[0].dtype)
    r = c = 0
    for m in mats:
        out = out.at[r:r + m.shape[0], c:c + m.shape[1]].set(m)
        r += m.shape[0]
        c += m.shape[1]
    return out


def prepare_fused_decoder_params(heads, *, param_dtype=jnp.bfloat16):
    """Fuse per-head RPDecoder params once (call outside the per-step path).

    heads: list of dicts with keys:
      'w1' (Cin, Cin), 'b1' (Cin,), 'w2' (Cin, out_h), 'b2' (out_h,),
      'sigmoid' (bool).  Weights are (in, out), i.e. torch Linear.weight.T.
    """
    cin = heads[0]['w1'].shape[0]
    for hd in heads:
        assert hd['w1'].shape == (cin, cin), 'w1 must be (Cin, Cin) = Linear.weight.T'
        assert hd['w2'].shape[0] == cin, 'w2 must be (Cin, out) = Linear.weight.T'
    total_out = sum(hd['w2'].shape[1] for hd in heads)

    w1 = jnp.concatenate([hd['w1'].astype(jnp.float32) for hd in heads], axis=1)
    b1 = jnp.concatenate([hd['b1'].reshape(-1).astype(jnp.float32)
                          for hd in heads]).reshape(1, -1)
    w2 = _block_diag([hd['w2'].astype(jnp.float32) for hd in heads])
    b2 = jnp.concatenate([hd['b2'].reshape(-1).astype(jnp.float32)
                          for hd in heads]).reshape(1, -1)
    sig = jnp.concatenate(
        [jnp.full((hd['w2'].shape[1],),
                  1.0 if hd.get('sigmoid', False) else 0.0, jnp.float32)
         for hd in heads]).reshape(1, -1)

    return dict(w1=w1.astype(param_dtype), b1=b1,
                w2=w2.astype(param_dtype), b2=b2,
                sig=sig, cin=cin, total_out=total_out)


# ----------------------------------------------------------------------------
# Per-call wrapper (x-side work only)
# ----------------------------------------------------------------------------
def fused_rp_decoder(x, params, *, block_rows=256):
    """All RPDecoder heads of RAM in one pallas_call.

    x: (B, Cin) feature vectors from the RPEncoder; pass bf16 straight through
       from the producer (no wrapper cast).
    Returns (B, total_out) float32: per-head outputs concatenated column-wise.
    """
    B, cin = x.shape
    assert cin == params['cin']
    w1, b1, w2, b2, sig = (params[k] for k in ('w1', 'b1', 'w2', 'b2', 'sig'))
    hid = w1.shape[1]
    total_out = params['total_out']

    # Large tile (amortize ~0.35us/step), but >= 2 grid steps whenever B allows
    # so both v7x TensorCores get work under dimension_semantics=("parallel",).
    tm = min(block_rows, max(8, _round_up(pl.cdiv(B, 2), 8)))
    grid = (pl.cdiv(B, tm),)   # partial last block: OOB rows masked on store

    flops = 2 * B * (cin * hid + hid * total_out)
    bytes_accessed = (x.size * x.dtype.itemsize
                      + w1.size * w1.dtype.itemsize
                      + w2.size * w2.dtype.itemsize
                      + b1.size * 4 + b2.size * 4 + sig.size * 4
                      + B * total_out * 4)

    return pl.pallas_call(
        _fused_heads_kernel,
        out_shape=jax.ShapeDtypeStruct((B, total_out), jnp.float32),
        grid=grid,
        in_specs=[
            pl.BlockSpec((tm, cin), lambda i: (i, 0)),         # x tile (streams)
            pl.BlockSpec((cin, hid), lambda i: (0, 0)),        # W1_all (resident)
            pl.BlockSpec((1, hid), lambda i: (0, 0)),          # b1_all (resident)
            pl.BlockSpec((hid, total_out), lambda i: (0, 0)),  # W2_all block-diag
            pl.BlockSpec((1, total_out), lambda i: (0, 0)),    # b2_all (resident)
            pl.BlockSpec((1, total_out), lambda i: (0, 0)),    # sigmoid col mask
        ],
        out_specs=pl.BlockSpec((tm, total_out), lambda i: (i, 0)),
        compiler_params=pltpu.CompilerParams(
            dimension_semantics=("parallel",)),
        cost_estimate=pl.CostEstimate(
            flops=flops, transcendentals=B * total_out,
            bytes_accessed=bytes_accessed),
    )(x, w1, b1, w2, b2, sig)


# ----------------------------------------------------------------------------
# References
# ----------------------------------------------------------------------------
def _reference_heads_f32(x, heads):
    xf = x.astype(jnp.float32)
    outs = []
    for hd in heads:
        h = xf @ hd['w1'].astype(jnp.float32) + hd['b1'].reshape(1, -1)
        h = jnp.where(h > 0, h, 0.01 * h)
        y = h @ hd['w2'].astype(jnp.float32) + hd['b2'].reshape(1, -1)
        if hd.get('sigmoid', False):
            y = jax.nn.sigmoid(y)
        outs.append(y)
    return jnp.concatenate(outs, axis=1)


def _reference_heads_bf16(x, heads):
    # Same precision recipe as the kernel (bf16 MXU inputs, f32 accumulate).
    xb = x.astype(jnp.bfloat16)
    outs = []
    for hd in heads:
        h = jnp.dot(xb, hd['w1'].astype(jnp.bfloat16),
                    preferred_element_type=jnp.float32) + hd['b1'].reshape(1, -1)
        h = jnp.maximum(h, 0.01 * h)
        y = jnp.dot(h.astype(jnp.bfloat16), hd['w2'].astype(jnp.bfloat16),
                    preferred_element_type=jnp.float32) + hd['b2'].reshape(1, -1)
        if hd.get('sigmoid', False):
            y = jax.nn.sigmoid(y)
        outs.append(y)
    return jnp.concatenate(outs, axis=1)


if __name__ == "__main__":
    # RAM defaults: image channels = 3, RPEncoder feature width = 128.
    # functions = ['gamma', 'ccm', 'wb', 'brightness'] -> head widths:
    #   gamma 1 (+sigmoid), ccm 3*3=9, wb 3, brightness 1 (+sigmoid).
    in_channels = 128       # RPDecoder in_channels (RPEncoder out_channels)
    img_channels = 3
    batch = 37              # small; non-multiple of 8 exercises masked last block

    key = jax.random.PRNGKey(0)
    k_x, key = jax.random.split(key)
    # Feature vectors as the encoder would hand them over: bf16 at the boundary.
    x = jax.random.normal(k_x, (batch, in_channels), dtype=jnp.bfloat16)

    head_defs = [('gamma', 1, True), ('ccm', img_channels ** 2, False),
                 ('wb', img_channels, False), ('brightness', 1, True)]
    scale = float(in_channels) ** -0.5
    heads = []
    for name, width, sig in head_defs:
        k1, k2, k3, k4, key = jax.random.split(key, 5)
        heads.append(dict(
            name=name,
            w1=jax.random.uniform(k1, (in_channels, in_channels), jnp.float32,
                                  -scale, scale),
            b1=jax.random.uniform(k2, (in_channels,), jnp.float32, -scale, scale),
            w2=jax.random.uniform(k3, (in_channels, width), jnp.float32,
                                  -scale, scale),
            b2=jax.random.uniform(k4, (width,), jnp.float32, -scale, scale),
            sigmoid=sig))

    params = prepare_fused_decoder_params(heads)   # one-time prep (hoisted)

    out = fused_rp_decoder(x, params)
    out = jax.block_until_ready(out)
    total_out = sum(w for _, w, _ in head_defs)
    assert out.shape == (batch, total_out)

    # Strict check vs. a same-precision (bf16 weights, f32 accumulate) reference.
    ref_bf16 = _reference_heads_bf16(x, heads)
    assert jnp.allclose(out, ref_bf16, atol=2e-3, rtol=2e-3), \
        "mismatch vs bf16-matched reference"

    # Sanity check vs. the full-f32 PyTorch-semantics reference (bf16 rounding).
    ref_f32 = _reference_heads_f32(x, heads)
    assert jnp.allclose(out, ref_f32, atol=5e-2, rtol=5e-2), \
        "mismatch vs f32 reference"

    print("KERNEL_OK")
</pallas_src>

<mosaic_0001>
module attributes {stable_mosaic.version = 11 : i64} {
  func.func @_fused_heads_kernel(%arg0: i32, %arg1: memref<24x128xbf16, #tpu.memory_space<vmem>>, %arg2: memref<128x512xbf16, #tpu.memory_space<vmem>>, %arg3: memref<1x512xf32, #tpu.memory_space<vmem>>, %arg4: memref<512x14xbf16, #tpu.memory_space<vmem>>, %arg5: memref<1x14xf32, #tpu.memory_space<vmem>>, %arg6: memref<1x14xf32, #tpu.memory_space<vmem>>, %arg7: memref<24x14xf32, #tpu.memory_space<vmem>>) attributes {dimension_semantics = [#tpu.dimension_semantics<parallel>], iteration_bounds = array<i64: 2>, scalar_prefetch = 0 : i64, scratch_operands = 0 : i64, tpu.core_type = #tpu.core_type<tc>, window_params = [{transform_indices = @transform_0, window_bounds = array<i64: 24, 128>}, {pipeline_mode = #tpu.pipeline_mode<synchronous>, transform_indices = @transform_1, window_bounds = array<i64: 128, 512>}, {pipeline_mode = #tpu.pipeline_mode<synchronous>, transform_indices = @transform_2, window_bounds = array<i64: 1, 512>}, {pipeline_mode = #tpu.pipeline_mode<synchronous>, transform_indices = @transform_3, window_bounds = array<i64: 512, 14>}, {pipeline_mode = #tpu.pipeline_mode<synchronous>, transform_indices = @transform_4, window_bounds = array<i64: 1, 14>}, {pipeline_mode = #tpu.pipeline_mode<synchronous>, transform_indices = @transform_5, window_bounds = array<i64: 1, 14>}, {transform_indices = @transform_6, window_bounds = array<i64: 24, 14>}]} {
    %c0 = arith.constant 0 : index
    %c0_0 = arith.constant 0 : index
    %0 = vector.load %arg1[%c0, %c0_0] : memref<24x128xbf16, #tpu.memory_space<vmem>>, vector<24x128xbf16>
    %c0_1 = arith.constant 0 : index
    %c0_2 = arith.constant 0 : index
    %1 = vector.load %arg2[%c0_1, %c0_2] : memref<128x512xbf16, #tpu.memory_space<vmem>>, vector<128x512xbf16>
    %cst = arith.constant dense<0.000000e+00> : vector<24x512xf32>
    %2 = tpu.matmul %0, %1, %cst {dimension_numbers = #tpu.dot_dimension_numbers<[1], [0], [0], [1], [0, 0, 1, 1], [], []>} : vector<24x128xbf16>, vector<128x512xbf16>, vector<24x512xf32> -> vector<24x512xf32>
    %c0_3 = arith.constant 0 : index
    %c0_4 = arith.constant 0 : index
    %3 = vector.load %arg3[%c0_3, %c0_4] : memref<1x512xf32, #tpu.memory_space<vmem>>, vector<1x512xf32>
    %4 = vector.broadcast %3 : vector<1x512xf32> to vector<24x512xf32>
    %5 = arith.addf %2, %4 : vector<24x512xf32>
    %cst_5 = arith.constant 0.00999999977 : f32
    %6 = vector.broadcast %cst_5 : f32 to vector<24x512xf32>
    %7 = arith.mulf %6, %5 : vector<24x512xf32>
    %8 = arith.maximumf %5, %7 : vector<24x512xf32>
    %9 = arith.truncf %8 : vector<24x512xf32> to vector<24x512xbf16>
    %c0_6 = arith.constant 0 : index
    %c0_7 = arith.constant 0 : index
    %10 = vector.load %arg4[%c0_6, %c0_7] : memref<512x14xbf16, #tpu.memory_space<vmem>>, vector<512x14xbf16>
    %cst_8 = arith.constant dense<0.000000e+00> : vector<24x14xf32>
    %11 = tpu.matmul %9, %10, %cst_8 {dimension_numbers = #tpu.dot_dimension_numbers<[1], [0], [0], [1], [0, 0, 1, 1], [], []>} : vector<24x512xbf16>, vector<512x14xbf16>, vector<24x14xf32> -> vector<24x14xf32>
    %c0_9 = arith.constant 0 : index
    %c0_10 = arith.constant 0 : index
    %12 = vector.load %arg5[%c0_9, %c0_10] : memref<1x14xf32, #tpu.memory_space<vmem>>, vector<1x14xf32>
    %13 = vector.broadcast %12 : vector<1x14xf32> to vector<24x14xf32>
    %14 = arith.addf %11, %13 : vector<24x14xf32>
    %c0_11 = arith.constant 0 : index
    %c0_12 = arith.constant 0 : index
    %15 = vector.load %arg6[%c0_11, %c0_12] : memref<1x14xf32, #tpu.memory_space<vmem>>, vector<1x14xf32>
    %cst_13 = arith.constant 5.000000e-01 : f32
    %16 = vector.broadcast %cst_13 : f32 to vector<1x14xf32>
    %17 = arith.cmpf ogt, %15, %16 : vector<1x14xf32>
    %18 = arith.negf %14 : vector<24x14xf32>
    %19 = math.exp %18 : vector<24x14xf32>
    %cst_14 = arith.constant 1.000000e+00 : f32
    %20 = vector.broadcast %cst_14 : f32 to vector<24x14xf32>
    %21 = arith.addf %20, %19 : vector<24x14xf32>
    %22 = arith.divf %20, %21 : vector<24x14xf32>
    %23 = vector.shape_cast %17 : vector<1x14xi1> to vector<1x14xi1>
    %24 = vector.broadcast %23 : vector<1x14xi1> to vector<24x14xi1>
    %25 = arith.select %24, %22, %14 : vector<24x14xi1>, vector<24x14xf32>
    %c0_15 = arith.constant 0 : index
    %c0_16 = arith.constant 0 : index
    %26 = vector.load %arg7[%c0_15, %c0_16] : memref<24x14xf32, #tpu.memory_space<vmem>>, vector<24x14xf32>
    tpu.vector_store %arg7[%c0_15, %c0_16], %25 {strides = array<i32>} : memref<24x14xf32, #tpu.memory_space<vmem>>, vector<24x14xf32>,
    return
  }
  func.func @transform_0(%arg0: i32) -> (i32, i32) {
    %c0_i32 = arith.constant 0 : i32
    %c0_i32_0 = arith.constant 0 : i32
    return %arg0, %c0_i32 : i32, i32
  }
  func.func @transform_1(%arg0: i32) -> (i32, i32) {
    %c0_i32 = arith.constant 0 : i32
    %c0_i32_0 = arith.constant 0 : i32
    %c0_i32_1 = arith.constant 0 : i32
    return %c0_i32, %c0_i32_0 : i32, i32
  }
  func.func @transform_2(%arg0: i32) -> (i32, i32) {
    %c0_i32 = arith.constant 0 : i32
    %c0_i32_0 = arith.constant 0 : i32
    %c0_i32_1 = arith.constant 0 : i32
    return %c0_i32, %c0_i32_0 : i32, i32
  }
  func.func @transform_3(%arg0: i32) -> (i32, i32) {
    %c0_i32 = arith.constant 0 : i32
    %c0_i32_0 = arith.constant 0 : i32
    %c0_i32_1 = arith.constant 0 : i32
    return %c0_i32, %c0_i32_0 : i32, i32
  }
  func.func @transform_4(%arg0: i32) -> (i32, i32) {
    %c0_i32 = arith.constant 0 : i32
    %c0_i32_0 = arith.constant 0 : i32
    %c0_i32_1 = arith.constant 0 : i32
    return %c0_i32, %c0_i32_0 : i32, i32
  }
  func.func @transform_5(%arg0: i32) -> (i32, i32) {
    %c0_i32 = arith.constant 0 : i32
    %c0_i32_0 = arith.constant 0 : i32
    %c0_i32_1 = arith.constant 0 : i32
    return %c0_i32, %c0_i32_0 : i32, i32
  }
  func.func @transform_6(%arg0: i32) -> (i32, i32) {
    %c0_i32 = arith.constant 0 : i32
    %c0_i32_0 = arith.constant 0 : i32
    return %arg0, %c0_i32 : i32, i32
  }
}

</mosaic_0001>

<bundles_post_ra>
// kernel: tpu_custom_call.1
= control target key start
LH: loop header
LB: loop body
LE: loop exit
PB: predicated region body
PF: predicated region fallthrough
CT: control target
= control target key end

     0   :  { %s1709_s21 = smov 0   ;;  %s1711_s22 = smov 0   ;;  %s2008_s0 = inlined_call_operand.vmem [shape: bf16[37,128], index: 0, kind: input, shape index: {}]   ;;  %s2009_s1 = inlined_call_operand.vmem [shape: bf16[128,512], index: 1, kind: input, shape index: {}]   ;;  %s2010_s2 = inlined_call_operand.vmem [shape: f32[1,512], index: 2, kind: input, shape index: {}]   ;;  %s2011_s3 = inlined_call_operand.vmem [shape: bf16[512,14], index: 3, kind: input, shape index: {}]   ;;  %s2012_s4 = inlined_call_operand.vmem [shape: f32[1,14], index: 4, kind: input, shape index: {}]   ;;  %s2013_s5 = inlined_call_operand.vmem [shape: f32[1,14], index: 5, kind: input, shape index: {}]   ;;  %s2014_s6 = inlined_call_operand.vmem [shape: f32[37,14], index: 6, kind: output, shape index: {}]  }
   0x1   :  { %s1713_s23 = smov 0  }
   0x2 LB: > { %s1722_s24 = sadd.s32 4294967295, %s1639_s23   ;;  %s1724_s25 = sadd.s32 1, %s1639_s23   ;;  %s1639_s23 = sphi %s1713_s23, %s2018_s23   ;;  %s1635_s22 = sphi %s1711_s22, %s2017_s22   ;;  %s1631_s21 = sphi %s1709_s21, %s2016_s21  }
   0x3   : > { %s151_s26 = ssub.s32 %s1639_s23, %s1724_s25  ;;  %s154_s27 = sadd.s32 1, %s1635_s22 }
   0x4   : > { %p152_p0 = scmp.eq.s32.totalorder %s151_s26, 0  ;;  %p164_p1 = scmp.ne.s32.totalorder %s1635_s22, %s1631_s21 }
   0x5   : > { %p165_p2 = scmp.eq.s32.totalorder %s1722_s24, 1  ;;  %p1255_p3 = scmp.ge.s32.totalorder %s1639_s23, 1 }
   0x6   : > { %s1732_s28 = scalar_select %p152_p0, %s1635_s22, %s154_s27  }
   0x7   : > { %p1734_p4 = por %p165_p2, %p164_p1  ;;  %p221_p5 = scmp.lt.s32.totalorder %s1639_s23, 3 }
   0x9   : > { %p222_p6 = pnand %p1255_p3, %p221_p5 }
   0xa   : > { %v1487_v0 = vld [vmem:[%s2009_s1 + $0x4] ss:$16 sps:$4 sm:$0xff] (!%p222_p6)   ;;  %v1489_v1 = vld [vmem:[%s2009_s1 + $0xc] ss:$16 sps:$4 sm:$0xff] (!%p222_p6)   ;;  %v1673_v2 = vmov (!%p222_p6), 0   ;;  %s1765_s26 = smul.u32 (!%p222_p6), 3, %s1722_s24 }
   0xb   : > { %225 = sbr.rel (%p222_p6) target bundleno = 584 (0x248), region = 44  ;;  %533 = vmatprep.mubr.bf16.mxu0 (!%p222_p6), %v1673_v2  ;;  %584 = vmatprep.mubr.bf16.mxu1 (!%p222_p6), %v1673_v2  ;;  %v1491_v3 = vld [vmem:[%s2009_s1] ss:$16 sps:$4 sm:$0xff] (!%p222_p6)   ;;  %v1492_v4 = vld [vmem:[%s2009_s1 + $0x8] ss:$16 sps:$4 sm:$0xff] (!%p222_p6)   ;;  %s251_s11 = sand.u32 (!%p222_p6), 1, %s1631_s21  }
   0xc   : > { %501 = vmatprep.subr.bf16.mxu0 (!%p222_p6), %v1487_v0  ;;  %552 = vmatprep.subr.bf16.mxu1 (!%p222_p6), %v1489_v1  ;;  %v1493_v5 = vld [vmem:[%s2009_s1 + $0x24] ss:$16 sps:$4 sm:$0xff] (!%p222_p6)   ;;  %v1495_v6 = vld [vmem:[%s2009_s1 + $0x2c] ss:$16 sps:$4 sm:$0xff] (!%p222_p6)   ;;  %v1497_v7 = vld [vmem:[%s2009_s1 + $0x20] ss:$16 sps:$4 sm:$0xff] (!%p222_p6)  }
   0xd   : > { %502 = vmatpush1.bf16.msra.mxu0 (!%p222_p6), %v1491_v3  ;;  %553 = vmatpush1.bf16.msra.mxu1 (!%p222_p6), %v1492_v4  ;;  %v1498_v8 = vld [vmem:[%s2009_s1 + $0x28] ss:$16 sps:$4 sm:$0xff] (!%p222_p6)   ;;  %v1499_v9 = vld [vmem:[%s2009_s1 + $0x44] ss:$16 sps:$4 sm:$0xff] (!%p222_p6)   ;;  %v1501_v10 = vld [vmem:[%s2009_s1 + $0x4c] ss:$16 sps:$4 sm:$0xff] (!%p222_p6)   ;;  %v311_v4 = vlaneseq (!%p222_p6) }
   0xe   : > { %503 = vmatprep.subr.bf16.mxu0 (!%p222_p6), %v1493_v5  ;;  %554 = vmatprep.subr.bf16.mxu1 (!%p222_p6), %v1495_v6  ;;  %v1503_v11 = vld [vmem:[%s2009_s1 + $0x40] ss:$16 sps:$4 sm:$0xff] (!%p222_p6)   ;;  %v1504_v12 = vld [vmem:[%s2009_s1 + $0x48] ss:$16 sps:$4 sm:$0xff] (!%p222_p6)   ;;  %v1505_v13 = vld [vmem:[%s2009_s1 + $0x64] ss:$16 sps:$4 sm:$0xff] (!%p222_p6)  }
   0xf   : > { %v1507_v14 = vld [vmem:[%s2009_s1 + $0x6c] ss:$16 sps:$4 sm:$0xff] (!%p222_p6)   ;;  %p259_p7 = scmp.lt.s32.totalorder (!%p222_p6), %s1765_s26, 4  ;;  %v1509_v15 = vld [vmem:[%s2009_s1 + $0x60] ss:$16 sps:$4 sm:$0xff] (!%p222_p6)   ;;  %v1946_v5 = vshrl.u32 (!%p222_p6), %v311_v4, 7 }
  0x10   : > { %v1510_v16 = vld [vmem:[%s2009_s1 + $0x68] ss:$16 sps:$4 sm:$0xff] (!%p222_p6)   ;;  %v1511_v17 = vld [vmem:[%s2009_s1 + $0x84] ss:$16 sps:$4 sm:$0xff] (!%p222_p6)   ;;  %v1513_v18 = vld [vmem:[%s2009_s1 + $0x8c] ss:$16 sps:$4 sm:$0xff] (!%p222_p6)  }
  0x11   : > { %504 = vmatpush1.bf16.msra.mxu0 (!%p222_p6), %v1497_v7  ;;  %555 = vmatpush1.bf16.msra.mxu1 (!%p222_p6), %v1498_v8  ;;  %v1515_v19 = vld [vmem:[%s2009_s1 + $0x80] ss:$16 sps:$4 sm:$0xff] (!%p222_p6)   ;;  %v1516_v20 = vld [vmem:[%s2009_s1 + $0x88] ss:$16 sps:$4 sm:$0xff] (!%p222_p6)   ;;  %v1517_v21 = vld [vmem:[%s2009_s1 + $0xa4] ss:$16 sps:$4 sm:$0xff] (!%p222_p6)  }
  0x12   : > { %505 = vmatprep.subr.bf16.mxu0 %v1499_v9  ;;  %556 = vmatprep.subr.bf16.mxu1 %v1501_v10  ;;  %s260_s8 = scalar_select %p259_p7, %s1765_s26, 4  ;;  %v1519_v22 = vld [vmem:[%s2009_s1 + $0xac] ss:$16 sps:$4 sm:$0xff]   ;;  %v1521_v23 = vld [vmem:[%s2009_s1 + $0xa0] ss:$16 sps:$4 sm:$0xff]   ;;  %v313_v6 = vsub.s32 0, %v1946_v5 }
  0x13   : > { %v1522_v24 = vld [vmem:[%s2009_s1 + $0xa8] ss:$16 sps:$4 sm:$0xff]   ;;  %v1523_v25 = vld [vmem:[%s2009_s1 + $0xc4] ss:$16 sps:$4 sm:$0xff]   ;;  %v1525_v26 = vld [vmem:[%s2009_s1 + $0xcc] ss:$16 sps:$4 sm:$0xff]  }
  0x14   : > { %s1256_s17 = sshll.u32 %s260_s8, 2  ;;  %v1527_v27 = vld [vmem:[%s2009_s1 + $0xc0] ss:$16 sps:$4 sm:$0xff]   ;;  %v1528_v28 = vld [vmem:[%s2009_s1 + $0xc8] ss:$16 sps:$4 sm:$0xff]   ;;  %v321_v7 = vsub.s32 2, %v1946_v5 }
  0x15   : > { %506 = vmatpush1.bf16.msra.mxu0 %v1503_v11  ;;  %557 = vmatpush1.bf16.msra.mxu1 %v1504_v12  ;;  %s1823_s10 = scalar_lea.vmem %s2008_s0, %s1256_s17  ;;  %v1529_v29 = vld [vmem:[%s2009_s1 + $0xe4] ss:$16 sps:$4 sm:$0xff]   ;;  %v1531_v30 = vld [vmem:[%s2009_s1 + $0xec] ss:$16 sps:$4 sm:$0xff]   ;;  %v1533_v31 = vld [vmem:[%s2009_s1 + $0xe0] ss:$16 sps:$4 sm:$0xff]  }
  0x16   : > { %507 = vmatprep.subr.bf16.mxu0 %v1505_v13  ;;  %558 = vmatprep.subr.bf16.mxu1 %v1507_v14  ;;  %v1534_v32 = vld [vmem:[%s2009_s1 + $0xe8] ss:$16 sps:$4 sm:$0xff]   ;;  %v1537_v33 = vld [vmem:[%s2011_s3 + $0x40] sm:$0xff]   ;;  %v1545_v43 = vld [vmem:[%s2011_s3 + $0x50] sm:$0xff]   ;;  %v317_v9 = vsub.s32 1, %v1946_v5  ;;  %v325_v10 = vsub.s32 3, %v1946_v5 }
  0x17   : > { %v1538_v34 = vld [vmem:[%s2011_s3 + $0xc0] sm:$0xff]   ;;  %v1541_v38 = vld [vmem:[%s2011_s3 + $0x48] sm:$0xff]   ;;  %v1546_v44 = vld [vmem:[%s2011_s3 + $0xd0] sm:$0xff]   ;;  %s1396_s12 = smul.u32 24, %s251_s11  ;;  %vm1023_vm2 = vcmask 113664   ;;  %s1035_s21 = ssub.s32 (%p1734_p4), 5, %s1765_s26 }
  0x18   : > { %v1535_v35 = vld [vmem:[%s1823_s10] sm:$0xff]   ;;  %v1542_v39 = vld [vmem:[%s2011_s3 + $0xc8] sm:$0xff]   ;;  %v1547_v45 = vld [vmem:[%s2011_s3 + $0x10] sm:$0xff]   ;;  %s1339_s14 = smul.u32 (%p1734_p4), 24, %s1722_s24  ;;  %p1036_p8 = scmp.lt.s32.totalorder (%p1734_p4), %s1035_s21, 3 }
  0x19   : > { %508 = vmatpush1.bf16.msra.mxu0 %v1509_v15  ;;  %559 = vmatpush1.bf16.msra.mxu1 %v1510_v16  ;;  %v1539_v36 = vld [vmem:[%s2011_s3] sm:$0xff]   ;;  %v1543_v40 = vld [vmem:[%s2011_s3 + $0x8] sm:$0xff]   ;;  %v1548_v46 = vld [vmem:[%s2011_s3 + $0x90] sm:$0xff]   ;;  %s1967_s13 = scalar_lea.vmem [#allocation2], %s1396_s12  }
  0x1a   : > { %509 = vmatprep.subr.bf16.mxu0 %v1511_v17  ;;  %560 = vmatprep.subr.bf16.mxu1 %v1513_v18  ;;  %v1540_v37 = vld [vmem:[%s2011_s3 + $0x80] sm:$0xff]   ;;  %v1544_v41 = vld [vmem:[%s2011_s3 + $0x88] sm:$0xff]   ;;  %v1549_v47 = vld [vmem:[%s2011_s3 + $0x58] sm:$0xff]   ;;  %s1979_s16 = scalar_lea.vmem (%p1734_p4), %s2014_s6, %s1339_s14  }
  0x1b   : > { %v1536_v42 = vld [vmem:[%s1823_s10 + $0x8] ss:$0 sps:$4 sm:$0xff]   ;;  %v1550_v48 = vld [vmem:[%s2011_s3 + $0xd8] sm:$0xff]   ;;  %v1553_v51 = vld [vmem:[%s2011_s3 + $0x60] sm:$0xff]  }
  0x1c   : > { %v1551_v49 = vld [vmem:[%s2011_s3 + $0x18] sm:$0xff]   ;;  %v1554_v52 = vld [vmem:[%s2011_s3 + $0xe0] sm:$0xff]   ;;  %v1557_v55 = vld [vmem:[%s2011_s3 + $0x68] sm:$0xff]  }
  0x1d   : > { %510 = vmatpush1.bf16.msra.mxu0 %v1515_v19  ;;  %561 = vmatpush1.bf16.msra.mxu1 %v1516_v20  ;;  %v1552_v50 = vld [vmem:[%s2011_s3 + $0x98] sm:$0xff]   ;;  %v1555_v53 = vld [vmem:[%s2011_s3 + $0x20] sm:$0xff]   ;;  %v1558_v56 = vld [vmem:[%s2011_s3 + $0xe8] sm:$0xff]  }
  0x1e   : > { %511 = vmatprep.subr.bf16.mxu0 %v1517_v21  ;;  %562 = vmatprep.subr.bf16.mxu1 %v1519_v22  ;;  %v1556_v54 = vld [vmem:[%s2011_s3 + $0xa0] sm:$0xff]   ;;  %v1559_v57 = vld [vmem:[%s2011_s3 + $0x28] sm:$0xff]   ;;  %v1561_v59 = vld [vmem:[%s2011_s3 + $0x70] sm:$0xff]  }
  0x1f   : > { %v1560_v58 = vld [vmem:[%s2011_s3 + $0xa8] sm:$0xff]   ;;  %v1562_v60 = vld [vmem:[%s2011_s3 + $0xf0] sm:$0xff]   ;;  %v1565_v63 = vld [vmem:[%s2011_s3 + $0x78] sm:$0xff]  }
  0x20   : > { %v1563_v61 = vld [vmem:[%s2011_s3 + $0x30] sm:$0xff]   ;;  %v1566_v0 = vld [vmem:[%s2011_s3 + $0xf8] sm:$0xff]   ;;  %v309_v8 = vld [vmem:[%s2010_s2] sm:$0xf] }
  0x21   : > { %512 = vmatpush1.bf16.msra.mxu0 %v1521_v23  ;;  %563 = vmatpush1.bf16.msra.mxu1 %v1522_v24  ;;  %v1564_v62 = vld [vmem:[%s2011_s3 + $0xb0] sm:$0xff]   ;;  %v1567_v1 = vld [vmem:[%s2011_s3 + $0x38] sm:$0xff]   ;;  %v314_v11 = vrot.slane %v309_v8, %v313_v6  ;;  %v322_v12 = vrot.slane %v309_v8, %v321_v7  ;;  %v318_v13 = vrot.slane %v309_v8, %v317_v9 }
  0x22   : > { %513 = vmatprep.subr.bf16.mxu0 %v1523_v25  ;;  %564 = vmatprep.subr.bf16.mxu1 %v1525_v26  ;;  %v1568_v3 = vld [vmem:[%s2011_s3 + $0xb8] sm:$0xff]   ;;  %v326_v14 = vrot.slane %v309_v8, %v325_v10 }
  0x25   : > { %514 = vmatpush1.bf16.msra.mxu0 %v1527_v27  ;;  %565 = vmatpush1.bf16.msra.mxu1 %v1528_v28 }
  0x26   : > { %515 = vmatprep.subr.bf16.mxu0 %v1529_v29  ;;  %566 = vmatprep.subr.bf16.mxu1 %v1531_v30 }
  0x29   : > { %516 = vmatpush1.bf16.msra.mxu0 %v1533_v31  ;;  %567 = vmatpush1.bf16.msra.mxu1 %v1534_v32 }
  0x2a   : > { %1340 = vmatprep.subr.bf16.mxu0 %v1537_v33  ;;  %1368 = vmatprep.subr.bf16.mxu1 %v1538_v34 }
  0x2c   : > { %534 = vmatmul.mubr.bf16.vlgmr.msra.gmra.mrb[0].mxu0 %v1535_v35  ;;  %585 = vmatmul.mubr.bf16.vlgmr.msra.gmra.mrb[0].mxu1 %v1535_v35 }
  0x2d   : > { %543 = vmatprep.mubr.bf16.mxu0 %v1673_v2  ;;  %594 = vmatprep.mubr.bf16.mxu1 %v1673_v2 }
  0x2e   : > { %1341 = vmatpush3.bf16.msra.mxu0 %v1539_v36  ;;  %1369 = vmatpush3.bf16.msra.mxu1 %v1540_v37 }
  0x2f   : > { %1342 = vmatprep.subr.bf16.mxu0 %v1541_v38  ;;  %1370 = vmatprep.subr.bf16.mxu1 %v1542_v39 }
  0x32   : > { %1343 = vmatpush3.bf16.msra.mxu0 %v1543_v40  ;;  %1371 = vmatpush3.bf16.msra.mxu1 %v1544_v41 }
  0x33   : > { %1344 = vmatprep.subr.bf16.mxu0 %v1545_v43  ;;  %1372 = vmatprep.subr.bf16.mxu1 %v1546_v44 }
  0x34   : > { %544 = vmatmul.mubr.bf16.gmra.mrb[4].mxu0 %v1536_v42  ;;  %595 = vmatmul.mubr.bf16.gmra.mrb[4].mxu1 %v1536_v42 }
  0x36   : > { %1345 = vmatpush3.bf16.msra.mxu0 %v1547_v45  ;;  %1373 = vmatpush3.bf16.msra.mxu1 %v1548_v46 }
  0x37   : > { %1346 = vmatprep.subr.bf16.mxu0 %v1549_v47  ;;  %1374 = vmatprep.subr.bf16.mxu1 %v1550_v48 }
  0x3a   : > { %1347 = vmatpush3.bf16.msra.mxu0 %v1551_v49  ;;  %1375 = vmatpush3.bf16.msra.mxu1 %v1552_v50 }
  0x3b   : > { %1348 = vmatprep.subr.bf16.mxu0 %v1553_v51  ;;  %1376 = vmatprep.subr.bf16.mxu1 %v1554_v52 }
  0x3e   : > { %1349 = vmatpush3.bf16.msra.mxu0 %v1555_v53  ;;  %1377 = vmatpush3.bf16.msra.mxu1 %v1556_v54 }
  0x3f   : > { %1350 = vmatprep.subr.bf16.mxu0 %v1557_v55  ;;  %1378 = vmatprep.subr.bf16.mxu1 %v1558_v56 }
  0x42   : > { %1351 = vmatpush3.bf16.msra.mxu0 %v1559_v57  ;;  %1379 = vmatpush3.bf16.msra.mxu1 %v1560_v58 }
  0x43   : > { %1352 = vmatprep.subr.bf16.mxu0 %v1561_v59  ;;  %1380 = vmatprep.subr.bf16.mxu1 %v1562_v60 }
  0x46   : > { %1353 = vmatpush3.bf16.msra.mxu0 %v1563_v61  ;;  %1381 = vmatpush3.bf16.msra.mxu1 %v1564_v62 }
  0x47   : > { %1354 = vmatprep.subr.bf16.mxu0 %v1565_v63  ;;  %1382 = vmatprep.subr.bf16.mxu1 %v1566_v0 }
  0x4a   : > { %1355 = vmatpush3.bf16.msra.mxu0 %v1567_v1  ;;  %1383 = vmatpush3.bf16.msra.mxu1 %v1568_v3 }
  0xff   : > { %v535_v15 = vpop.f32.mrb[0].mxu0  ;;  %v586_v16 = vpop.f32.mrb[0].mxu1 }
 0x100   : > { %v536_v17 = vadd.f32 %v535_v15, %v314_v11  ;;  %v587_v18 = vadd.f32 %v586_v16, %v322_v12  ;;  %v537_v19 = vpop.f32.mrb[1].mxu0  ;;  %v588_v20 = vpop.f32.mrb[1].mxu1  ;;  %v1291_v16 = vld [vmem:[%s2012_s4] ss:$0 sm:$0xff] }
 0x101   : > { %v538_v21 = vadd.f32 %v537_v19, %v318_v13  ;;  %v589_v22 = vadd.f32 %v588_v20, %v326_v14  ;;  %v539_v23 = vpop.f32.mrb[2].mxu0  ;;  %v590_v24 = vpop.f32.mrb[2].mxu1 }
 0x102   : > { %v603_v25 = vmul.f32 0.01, %v536_v17  ;;  %v605_v26 = vmul.f32 0.01, %v587_v18  ;;  %v540_v27 = vadd.f32 %v539_v23, %v314_v11  ;;  %v591_v28 = vadd.f32 %v590_v24, %v322_v12  ;;  %v541_v29 = vpop.f32.mrb[3].mxu0  ;;  %v592_v30 = vpop.f32.mrb[3].mxu1 }
 0x103   : > { %v604_v31 = vmul.f32 0.01, %v538_v21  ;;  %v606_v32 = vmul.f32 0.01, %v589_v22  ;;  %v542_v33 = vadd.f32 %v541_v29, %v318_v13  ;;  %v593_v34 = vadd.f32 %v592_v30, %v326_v14 }
 0x104   : > { %v607_v35 = vmul.f32 0.01, %v540_v27  ;;  %v609_v36 = vmul.f32 0.01, %v591_v28  ;;  %v615_v39 = vmax.f32 %v536_v17, %v603_v25  ;;  %v617_v40 = vmax.f32 %v587_v18, %v605_v26 }
 0x105   : > { %v608_v37 = vmul.f32 0.01, %v542_v33  ;;  %v610_v38 = vmul.f32 0.01, %v593_v34  ;;  %v616_v43 = vmax.f32 %v538_v21, %v604_v31  ;;  %v618_v44 = vmax.f32 %v589_v22, %v606_v32 }
 0x106   : > { %v619_v41 = vmax.f32 %v540_v27, %v607_v35  ;;  %v621_v42 = vmax.f32 %v591_v28, %v609_v36 }
 0x107   : > { %v620_v45 = vmax.f32 %v542_v33, %v608_v37  ;;  %v622_v46 = vmax.f32 %v593_v34, %v610_v38  ;;  %v545_v47 = vpop.f32.mrb[4].mxu0  ;;  %v596_v48 = vpop.f32.mrb[4].mxu1 }
 0x108   : > { %v627_v49 = vpack.c.bf16 %v619_v41, %v615_v39  ;;  %v629_v50 = vpack.c.bf16 %v621_v42, %v617_v40  ;;  %v546_v51 = vadd.f32 %v545_v47, %v314_v11  ;;  %v547_v52 = vpop.f32.mrb[5].mxu0  ;;  %v597_v53 = vadd.f32 %v596_v48, %v322_v12  ;;  %v598_v54 = vpop.f32.mrb[5].mxu1 }
 0x109   : > { %v548_v55 = vadd.f32 %v547_v52, %v318_v13  ;;  %v549_v56 = vpop.f32.mrb[6].mxu0  ;;  %v599_v57 = vadd.f32 %v598_v54, %v326_v14  ;;  %v600_v58 = vpop.f32.mrb[6].mxu1  ;;  %v628_v59 = vpack.c.bf16 %v620_v45, %v616_v43  ;;  %v630_v60 = vpack.c.bf16 %v622_v46, %v618_v44  ;;  %v994_v46 = vld [vmem:[%s2013_s5] sm:$0x1] }
 0x10a   : > { %v611_v61 = vmul.f32 0.01, %v546_v51  ;;  %v613_v62 = vmul.f32 0.01, %v597_v53  ;;  %v550_v63 = vpop.f32.mrb[7].mxu0  ;;  %v601_v0 = vpop.f32.mrb[7].mxu1 }
 0x10b   : > { %v612_v1 = vmul.f32 0.01, %v548_v55  ;;  %v614_v3 = vmul.f32 0.01, %v599_v57  ;;  %930 = vmatprep.mubr.bf16.mxu0 %v628_v59  ;;  %978 = vmatprep.mubr.bf16.mxu1 %v630_v60  ;;  %vm995_vm0 = vcmp.gt.f32.partialorder %v994_v46, 0.5 }
 0x10c   : > { %931 = vmatmul.mubr.bf16.vlgmr.msra.gmra.mrb[8].mxu0 %v627_v49  ;;  %979 = vmatmul.mubr.bf16.vlgmr.msra.gmra.mrb[8].mxu1 %v629_v50  ;;  %v623_v8 = vmax.f32 %v546_v51, %v611_v61  ;;  %v625_v9 = vmax.f32 %v597_v53, %v613_v62  ;;  %v1014_v51 = vsel %vm995_vm0, 1, %v1673_v2 }
 0x10d   : > { %v624_v4 = vmax.f32 %v548_v55, %v612_v1  ;;  %v626_v7 = vmax.f32 %v599_v57, %v614_v3  ;;  %v1018_v52 = vrot.slane %v1014_v51, %v313_v6 }
 0x10e   : > { %v631_v12 = vpack.c.bf16 %v623_v8, %v623_v8  ;;  %v633_v13 = vpack.c.bf16 %v625_v9, %v625_v9 }
 0x10f   : > { %v632_v10 = vpack.c.bf16 %v624_v4, %v624_v4  ;;  %v634_v11 = vpack.c.bf16 %v626_v7, %v626_v7  ;;  %vm1019_vm1 = vcmp.eq.s32.totalorder %v1018_v52, 1 }
 0x111   : > { %938 = vmatprep.mubr.bf16.mxu0 %v632_v10  ;;  %986 = vmatprep.mubr.bf16.mxu1 %v634_v11 }
 0x114   : > { %939 = vmatmul.mubr.bf16.gmra.mrb[12].mxu0 %v631_v12  ;;  %987 = vmatmul.mubr.bf16.gmra.mrb[12].mxu1 %v633_v13 }
 0x1df   : > { %v1356_v14 = vpop.f32.mrb[8].mxu0  ;;  %v1384_v15 = vpop.f32.mrb[8].mxu1 }
 0x1e0   : > { %v1357_v17 = vpop.f32.mrb[9].mxu0  ;;  %v1385_v18 = vpop.f32.mrb[9].mxu1 }
 0x1e1   : > { %v1358_v19 = vadd.f32 %v1357_v17, %v1356_v14  ;;  %v1386_v20 = vadd.f32 %v1385_v18, %v1384_v15  ;;  %v1359_v21 = vpop.f32.mrb[10].mxu0  ;;  %v1387_v22 = vpop.f32.mrb[10].mxu1 }
 0x1e2   : > { %v1360_v23 = vpop.f32.mrb[11].mxu0  ;;  %v1388_v24 = vpop.f32.mrb[11].mxu1 }
 0x1e3   : > { %v933_v25 = vadd.f32 %v1358_v19, %v1291_v16  ;;  %v1361_v26 = vadd.f32 %v1360_v23, %v1359_v21  ;;  %v1389_v27 = vadd.f32 %v1388_v24, %v1387_v22 }
 0x1e5   : > { %v981_v28 = vadd.f32 %v1386_v20, %v933_v25  ;;  %v936_v29 = vadd.f32 %v1361_v26, %v1291_v16 }
 0x1e7   : > { %v1324_v30 = vmul.f32 -1.442695, %v981_v28  ;;  %v984_v31 = vadd.f32 %v1389_v27, %v936_v29  ;;  %v1362_v32 = vpop.f32.mrb[12].mxu0  ;;  %v1390_v33 = vpop.f32.mrb[12].mxu1 }
 0x1e8   : > { %v1363_v34 = vpop.f32.mrb[13].mxu0  ;;  %v1391_v35 = vpop.f32.mrb[13].mxu1 }
 0x1e9   : > { %1569 = vpow2.f32 %v1324_v30  ;;  %v1325_v36 = vmul.f32 -1.442695, %v984_v31  ;;  %v1364_v37 = vadd.f32 %v1363_v34, %v1362_v32  ;;  %v1392_v38 = vadd.f32 %v1391_v35, %v1390_v33  ;;  %v1365_v39 = vpop.f32.mrb[14].mxu0  ;;  %v1393_v40 = vpop.f32.mrb[14].mxu1 }
 0x1ea   : > { %v1366_v41 = vpop.f32.mrb[15].mxu0  ;;  %v1394_v42 = vpop.f32.mrb[15].mxu1 }
 0x1eb   : > { %1571 = vpow2.f32 %v1325_v36  ;;  %v941_v43 = vadd.f32 %v1364_v37, %v1291_v16 }
 0x1ed   : > { %v989_v44 = vadd.f32 %v1392_v38, %v941_v43 }
 0x1ef   : > { %v1326_v45 = vmul.f32 -1.442695, %v989_v44 }
 0x1f1   : > { %1573 = vpow2.f32 %v1326_v45 }
 0x1f3   : > { %v1570_v47 = vpop.eup %1569 }
 0x1f4   : > { %v1005_v48 = vadd.f32 1.0, %v1570_v47 }
 0x1f5   : > { %v1572_v49 = vpop.eup %1571 }
 0x1f6   : > { %1575 = vrcp.f32 %v1005_v48  ;;  %v1006_v50 = vadd.f32 1.0, %v1572_v49 }
 0x1f8   : > { %1577 = vrcp.f32 %v1006_v50 }
 0x1fb   : > { %v1574_v53 = vpop.eup %1573 }
 0x1fc   : > { %v1007_v54 = vadd.f32 1.0, %v1574_v53 }
 0x1fe   : > { %1579 = vrcp.f32 %v1007_v54 }
 0x200   : > { %v1576_v55 = vpop.eup %1575 }
 0x201   : > { %v1020_v56 = vsel %vm1019_vm1, %v1576_v55, %v981_v28 }
 0x202   : > { %v1578_v57 = vpop.eup %1577  ;;  %1024 = vst.msk [vmem:[%s1967_s13] sm:$0xff] %vm1023_vm2, %v1020_v56 }
 0x203   : > { %v1021_v2 = vsel %vm1019_vm1, %v1578_v57, %v984_v31 }
 0x204   : > { %1025 = vst.msk [vmem:[%s1967_s13 + $0x8] sm:$0xff] %vm1023_vm2, %v1021_v2  ;;  %1033 = sbr.rel (!%p1734_p4) target bundleno = 584 (0x248), region = 48 }
 0x208   : > { %v1580_v58 = vpop.eup %1579 }
 0x209   : > { %v1022_v5 = vsel %vm1019_vm1, %v1580_v58, %v989_v44 }
 0x20a   : > { %1026 = vst.msk [vmem:[%s1967_s13 + $0x10] sm:$0xff] %vm1023_vm2, %v1022_v5 }
 0x20b   : > { %s2020_s21 = smov (!%p1036_p8, %s1035_s21), 3 }
 0x20c   : > { %s1327_s17 = sshll.u32 %s2020_s21, 7 }
 0x20d   : > { %p1330_p9 = scmp.eq.s32.totalorder %s1327_s17, 0 }
 0x20e   : > { %1581 = sdivrem.u32 (!%p1330_p9), %s2020_s21, 3 }
 0x20f   : > { %1044 = sbr.rel (%p1330_p9) target bundleno = 584 (0x248), region = 52 }
 0x217   : > { %s1985_s29 = spop.drf %1581 }
 0x218   : > { %p1331_p10 = scmp.le.s32.totalorder %s1985_s29, 0 }
 0x219   : > { %s1641_s24 = smov (!%p1331_p10), %s1979_s16   ;;  %s1645_s26 = smov (!%p1331_p10), %s1967_s13  }
 0x21a   : > { %1208 = sbr.rel (%p1331_p10) target bundleno = 555 (0x22b), region = 128  ;;  %s1649_s18 = smov (!%p1331_p10), 0  }
 0x21b   : > { %s1653_s19 = smov (!%p1331_p10), 0  }
 0x221 LB: >> { %v1112_v6 = vld [vmem:[%s1647_s26] sm:$0xff]  ;;  %v1114_v59 = vld [vmem:[%s1647_s26 + $0x8] sm:$0xff]  ;;  %v1116_v60 = vld [vmem:[%s1647_s26 + $0x10] sm:$0xff]  ;;  %s1118_s20 = sadd.s32 1, %s1651_s18  ;;  %s1106_s19 = sadd.s32 1, %s1655_s19   ;;  %s1655_s19 = sphi %s1653_s19, %s1106_s19   ;;  %s1651_s18 = sphi %s1649_s18, %s1650_s18   ;;  %s1647_s26 = sphi %s1645_s26, %s1123_s26   ;;  %s1643_s24 = sphi %s1641_s24, %s1124_s24  }
 0x222   : >> { %1113 = vst [vmem:[%s1643_s24] sm:$0xff] %v1112_v6  ;;  %1115 = vst [vmem:[%s1643_s24 + $0x8] sm:$0xff] %v1114_v59  ;;  %p1119_p11 = scmp.ge.s32.totalorder %s1118_s20, %s1985_s29  ;;  %p1105_p12 = scmp.ge.s32.totalorder %s1106_s19, %s1985_s29 }
 0x223   : >> { %1117 = vst [vmem:[%s1643_s24 + $0x10] sm:$0xff] %v1116_v60 }
 0x224   : >> { %s2022_s20 = smov (%p1119_p11, %s1118_s20), 0  ;;  %1108 = sbr.rel (!%p1105_p12) target bundleno = 545 (0x221), region = 134 }
 0x225   : >> { %s1121_s23 = smul.u32 24, %s2022_s20  ;;  %s1650_s18 = smov %s2022_s20  }
 0x227   : >> { %s1123_s26 = scalar_lea.vmem %s1967_s13, %s1121_s23 [#allocation2]   ;;  %s1124_s24 = scalar_lea.vmem %s1979_s16, %s1121_s23  }
 0x22b PF: > { %1583 = sdivrem.u32 %s2020_s21, 3 }
 0x22c   : > { %s1332_s27 = smul.u32 24, %s1985_s29 }
 0x22e   : > { %s1129_s30 = scalar_lea.vmem %s1967_s13, %s1332_s27 [#allocation2]   ;;  %s1131_s7 = scalar_lea.vmem %s1979_s16, %s1332_s27  }
 0x234   : > { %s1584_s9 = spop.drf %1583 }
 0x235   : > { %p1334_p13 = scmp.le.s32.totalorder %s1584_s9, 0 }
 0x236   : > { %s1657_s8 = smov (!%p1334_p13), %s1131_s7   ;;  %s1661_s11 = smov (!%p1334_p13), %s1129_s30  }
 0x237   : > { %1222 = sbr.rel (%p1334_p13) target bundleno = 584 (0x248), region = 139  ;;  %s1665_s12 = smov (!%p1334_p13), 0  }
 0x238   : > { %s1669_s14 = smov (!%p1334_p13), 0  }
 0x23e LB: >> { %v1141_v61 = vld [vmem:[%s1663_s11] sm:$0xff]  ;;  %s1143_s15 = sadd.s32 1, %s1667_s12  ;;  %s1135_s14 = sadd.s32 1, %s1671_s14   ;;  %s1671_s14 = sphi %s1669_s14, %s1135_s14   ;;  %s1667_s12 = sphi %s1665_s12, %s1666_s12   ;;  %s1663_s11 = sphi %s1661_s11, %s1148_s11   ;;  %s1659_s8 = sphi %s1657_s8, %s1149_s8  }
 0x23f   : >> { %1142 = vst [vmem:[%s1659_s8] sm:$0xff] %v1141_v61  ;;  %p1144_p0 = scmp.ge.s32.totalorder %s1143_s15, %s1584_s9  ;;  %p1134_p1 = scmp.ge.s32.totalorder %s1135_s14, %s1584_s9 }
 0x241   : >> { %s2024_s15 = smov (%p1144_p0, %s1143_s15), 0  ;;  %1137 = sbr.rel (!%p1134_p1) target bundleno = 574 (0x23e), region = 145 }
 0x242   : >> { %s1335_s13 = sshll.u32 %s2024_s15, 3  ;;  %s1666_s12 = smov %s2024_s15  }
 0x243   : >> { %s1148_s11 = scalar_lea.vmem %s1129_s30, %s1335_s13 [#allocation2]   ;;  %s1149_s8 = scalar_lea.vmem %s1131_s7, %s1335_s13  }
 0x248 PF: > { %p13_p2 = scmp.ge.s32.totalorder %s1724_s25, 4   ;;  %s2016_s21 = smov %s1635_s22 }
 0x249   : > { %s2017_s22 = smov %s1732_s28  ;;  %s2018_s23 = smov %s1724_s25 }
 0x24a   :  { %15 = sbr.rel (!%p13_p2) target bundleno = 2 (0x2), region = 156 }

</bundles_post_ra>
